<compile_context>
chip_gen: v5e
topology: v5e:2x2
jax: 0.10.0
libtpu: 0.0.40
codegen_flags: <defaults>
</compile_context>

<pallas_src>
import math
from functools import partial

import jax
import jax.numpy as jnp
from jax import lax
from jax.experimental import pallas as pl
from jax.experimental.pallas import tpu as pltpu

_F32 = jnp.float32
_DB_SCALE = 10.0 / math.log(10.0)     # 10*log10(x) == _DB_SCALE * ln(x)
_HP = 128                             # padded per-gate width (lane aligned)


# -----------------------------------------------------------------------------
# Pallas kernel 1: mel-filterbank projection + AmplitudeToDB (power -> dB)
# -----------------------------------------------------------------------------
def _mel_db_kernel(spec_ref, fb_ref, out_ref):
    # spec_ref: (tile_m, Kp), fb_ref: (Kp, Np), out_ref: (tile_m, Np)
    mel = jnp.dot(spec_ref[...], fb_ref[...], preferred_element_type=_F32)
    mel = jnp.maximum(mel, 1e-10)                       # amin of AmplitudeToDB
    out_ref[...] = _DB_SCALE * jnp.log(mel)             # 10*log10, ref=1, top_db=None


def mel_db(power_spec, fb):
    B, T, F = power_spec.shape
    n_mels = fb.shape[1]
    Kp = pl.cdiv(F, 128) * 128                          # lane-align the K dim
    Np = pl.cdiv(n_mels, 128) * 128                     # lane-dense output stores
    M = B * T
    tile_m = min(256, pl.cdiv(M, 8) * 8)
    Mp = pl.cdiv(M, tile_m) * tile_m
    spec = jnp.pad(power_spec.reshape(M, F), ((0, Mp - M), (0, Kp - F)))
    fbp = jnp.pad(fb, ((0, Kp - F), (0, Np - n_mels)))
    out = pl.pallas_call(
        _mel_db_kernel,
        out_shape=jax.ShapeDtypeStruct((Mp, Np), _F32),
        grid=(Mp // tile_m,),
        in_specs=[
            pl.BlockSpec((tile_m, Kp), lambda i: (i, 0)),
            pl.BlockSpec((Kp, Np), lambda i: (0, 0)),
        ],
        out_specs=pl.BlockSpec((tile_m, Np), lambda i: (i, 0)),
        compiler_params=pltpu.CompilerParams(dimension_semantics=("parallel",)),
    )(spec, fbp)
    return out[:M, :n_mels].reshape(B, T, n_mels)


# -----------------------------------------------------------------------------
# Pallas kernel 2: fused cdur block = BN(eval) -> zero-pad -> 3x3 conv (no bias)
#                  -> LeakyReLU(0.1) -> optional LPPool2d(norm=4)
# -----------------------------------------------------------------------------
def _cdur_block_kernel(x_ref, s_ref, t_ref, w_ref, o_ref, *, pool_t, pool_w, im2col):
    # x_ref: (1, T, W, Cin); s/t_ref: (1, 1, Cin); o_ref: (1, To, Wo, Cout)
    _, T, W, Cin = x_ref.shape
    Cout = o_ref.shape[3]

    # BatchNorm2d (eval mode) as a per-channel affine on the VMEM tile.
    xb = x_ref[0] * s_ref[...] + t_ref[...]                       # (T, W, Cin) f32

    # zero padding (padding=1) done in-kernel (zeros of the BN'd input).
    zt = jnp.zeros((1, W, Cin), _F32)
    xp = jnp.concatenate([zt, xb, zt], axis=0)                    # (T+2, W, Cin)
    zw = jnp.zeros((T + 2, 1, Cin), _F32)
    xp = jnp.concatenate([zw, xp, zw], axis=1)                    # (T+2, W+2, Cin)

    if im2col:
        # Fold all 9 taps into one MXU contraction (K = 9*Cin), f32 acc.
        cols = [xp[kh:kh + T, kw:kw + W, :].reshape(T * W, Cin)
                for kh in range(3) for kw in range(3)]
        patch = jnp.concatenate(cols, axis=-1)                    # (T*W, 9*Cin)
        y = jnp.dot(patch, w_ref[...], preferred_element_type=_F32)  # (T*W, Cout)
    else:
        # Cin == 1: degenerate contraction -> broadcast FMAs on the VPU.
        acc = jnp.zeros((T, W, Cout), _F32)
        for kh in range(3):
            for kw in range(3):
                acc = acc + xp[kh:kh + T, kw:kw + W, :] * w_ref[kh, kw].reshape(1, 1, Cout)
        y = acc.reshape(T * W, Cout)

    y = jnp.where(y >= 0.0, y, 0.1 * y)                           # LeakyReLU(0.1)

    if pool_t == 1 and pool_w == 1:
        o_ref[0] = y.reshape(T, W, Cout)
        return

    # LPPool2d(norm_type=4, kernel=(pool_t, pool_w)), floor mode:
    #   (sum x^4 over window) ^ (1/4)
    y4 = y * y
    y4 = y4 * y4                                                  # x^4 (>= 0)
    Wo = W // pool_w
    if pool_w > 1:
        y4 = y4.reshape(T * Wo, pool_w, Cout).sum(axis=1)         # pool over mel
    y4 = y4.reshape(T, Wo, Cout)
    To = T // pool_t
    if pool_t > 1:
        y4 = y4[:To * pool_t].reshape(To, pool_t, Wo, Cout).sum(axis=1)  # pool over time
    o_ref[0] = jnp.sqrt(jnp.sqrt(y4))                             # ^(1/4)


def cdur_pool_block(x, block_params, pool_t, pool_w):
    gamma, beta, mean, var, w = block_params
    B, T, W, Cin = x.shape
    Cout = w.shape[3]
    assert W % pool_w == 0
    s = gamma / jnp.sqrt(var + 1e-5)                              # BN scale
    t = beta - mean * s                                           # BN shift
    im2col = Cin != 1
    if im2col:
        w_arg = w.reshape(9 * Cin, Cout)
        w_spec = pl.BlockSpec((9 * Cin, Cout), lambda b: (0, 0))
    else:
        w_arg = w
        w_spec = pl.BlockSpec((3, 3, Cin, Cout), lambda b: (0, 0, 0, 0))
    To, Wo = T // pool_t, W // pool_w
    return pl.pallas_call(
        partial(_cdur_block_kernel, pool_t=pool_t, pool_w=pool_w, im2col=im2col),
        out_shape=jax.ShapeDtypeStruct((B, To, Wo, Cout), _F32),
        grid=(B,),
        in_specs=[
            pl.BlockSpec((1, T, W, Cin), lambda b: (b, 0, 0, 0)),
            pl.BlockSpec((1, 1, Cin), lambda b: (0, 0, 0)),
            pl.BlockSpec((1, 1, Cin), lambda b: (0, 0, 0)),
            w_spec,
        ],
        out_specs=pl.BlockSpec((1, To, Wo, Cout), lambda b: (b, 0, 0, 0)),
        compiler_params=pltpu.CompilerParams(dimension_semantics=("parallel",)),
    )(x, s.reshape(1, 1, Cin), t.reshape(1, 1, Cin), w_arg)


# -----------------------------------------------------------------------------
# Pallas kernel 3: bidirectional GRU (PyTorch gate order [r, z, n])
#   - input projections for all T and both directions hoisted to one matmul
#   - gates zero-padded to 128 lanes each (lane-aligned slices/stores)
#   - single fused (T, B, 2*128) output
# -----------------------------------------------------------------------------
def _bigru_kernel(x_ref, wi_ref, bi_ref, whf_ref, bhf_ref, whb_ref, bhb_ref,
                  out_ref, gi_ref, *, unroll):
    T, B, D = x_ref.shape
    G = 3 * _HP

    # Hoisted input projection: (T*B, D) @ (D, 2*3*Hp) in one MXU call.
    x = x_ref[...].reshape(T * B, D)
    gi = jnp.dot(x, wi_ref[...], preferred_element_type=_F32) + bi_ref[...]
    gi_ref[...] = gi.reshape(T, B, 2 * G)

    whf = whf_ref[...]
    bhf = bhf_ref[...]
    whb = whb_ref[...]
    bhb = bhb_ref[...]

    def gates(gi_t, gh, h):
        r = jax.nn.sigmoid(gi_t[:, :_HP] + gh[:, :_HP])
        z = jax.nn.sigmoid(gi_t[:, _HP:2 * _HP] + gh[:, _HP:2 * _HP])
        n = jnp.tanh(gi_t[:, 2 * _HP:] + r * gh[:, 2 * _HP:])
        return (1.0 - z) * n + z * h

    def step(t, carry):
        hf, hb = carry
        # forward direction
        gh_f = jnp.dot(hf, whf, preferred_element_type=_F32) + bhf
        hf = gates(gi_ref[t, :, :G], gh_f, hf)
        out_ref[t, :, :_HP] = hf
        # backward direction
        tb = T - 1 - t
        gh_b = jnp.dot(hb, whb, preferred_element_type=_F32) + bhb
        hb = gates(gi_ref[tb, :, G:], gh_b, hb)
        out_ref[tb, :, _HP:] = hb
        return (hf, hb)

    h0 = jnp.zeros((B, _HP), _F32)
    lax.fori_loop(0, T, step, (h0, h0), unroll=unroll)


def bigru(x_bt, gru_params, embed_dim):
    B, T, D = x_bt.shape
    Hd = embed_dim // 2
    assert Hd <= _HP
    (wif, whf, bif, bhf, wib, whb, bib, bhb) = gru_params

    def pad_gates(a, rows_to=None):
        # a: (rows, 3*Hd) -> (rows[_pad], 3*_HP) with zero-padded gate columns.
        parts = [jnp.pad(a[:, g * Hd:(g + 1) * Hd], ((0, 0), (0, _HP - Hd)))
                 for g in range(3)]
        out = jnp.concatenate(parts, axis=1)
        if rows_to is not None:
            out = jnp.pad(out, ((0, rows_to - out.shape[0]), (0, 0)))
        return out

    wi_cat = jnp.concatenate([pad_gates(wif), pad_gates(wib)], axis=1)
    bi_cat = jnp.concatenate([pad_gates(bif), pad_gates(bib)], axis=1)
    whf_p = pad_gates(whf, rows_to=_HP)
    whb_p = pad_gates(whb, rows_to=_HP)
    bhf_p = pad_gates(bhf)
    bhb_p = pad_gates(bhb)

    x_tm = jnp.transpose(x_bt, (1, 0, 2))                 # (T, B, D) time-major
    vm = pl.BlockSpec(memory_space=pltpu.MemorySpace.VMEM)
    out = pl.pallas_call(
        partial(_bigru_kernel, unroll=bool(T <= 32)),
        out_shape=jax.ShapeDtypeStruct((T, B, 2 * _HP), _F32),
        in_specs=[vm] * 7,
        out_specs=vm,
        scratch_shapes=[pltpu.VMEM((T, B, 2 * 3 * _HP), _F32)],
    )(x_tm, wi_cat, bi_cat, whf_p, bhf_p, whb_p, bhb_p)
    # un-pad: valid hidden units are lanes [0:Hd] (fwd) and [_HP:_HP+Hd] (bwd)
    y = jnp.concatenate([out[..., :Hd], out[..., _HP:_HP + Hd]], axis=-1)
    return jnp.transpose(y, (1, 0, 2))                    # (B, T, 2*Hd)


# -----------------------------------------------------------------------------
# Glue: STFT power spectrogram, mel filterbank (XLA — no Pallas FFT primitive)
# -----------------------------------------------------------------------------
def _power_spectrogram(wav, n_fft, win_length, hop_length):
    # torchaudio MelSpectrogram defaults: center=True, pad_mode='reflect', power=2
    pad = n_fft // 2
    wav_p = jnp.pad(wav, ((0, 0), (pad, pad)), mode="reflect")
    n_frames = 1 + wav.shape[1] // hop_length
    idx = jnp.arange(n_frames)[:, None] * hop_length + jnp.arange(n_fft)[None, :]
    frames = wav_p[:, idx]                                    # (B, n_frames, n_fft)
    n = jnp.arange(win_length)
    hann = 0.5 * (1.0 - jnp.cos(2.0 * jnp.pi * n / win_length))  # periodic Hann
    lpad = (n_fft - win_length) // 2
    window = jnp.pad(hann, (lpad, n_fft - win_length - lpad))
    spec = jnp.fft.rfft(frames * window, axis=-1)
    return (jnp.abs(spec) ** 2).astype(_F32)                  # (B, n_frames, n_fft//2+1)


def _melscale_fbanks(n_freqs, f_min, f_max, n_mels, sample_rate):
    # torchaudio defaults: mel_scale='htk', norm=None
    def hz_to_mel(f):
        return 2595.0 * jnp.log10(1.0 + f / 700.0)

    def mel_to_hz(m):
        return 700.0 * (10.0 ** (m / 2595.0) - 1.0)

    all_freqs = jnp.linspace(0.0, sample_rate / 2.0, n_freqs)
    m_pts = jnp.linspace(hz_to_mel(f_min), hz_to_mel(f_max), n_mels + 2)
    f_pts = mel_to_hz(m_pts)
    f_diff = f_pts[1:] - f_pts[:-1]
    slopes = f_pts[None, :] - all_freqs[:, None]
    down = -slopes[:, :-2] / f_diff[:-1]
    up = slopes[:, 2:] / f_diff[1:]
    fb = jnp.clip(jnp.minimum(down, up), 0.0, None)
    return fb.astype(_F32)                                    # (n_freqs, n_mels)


# -----------------------------------------------------------------------------
# Parameters (deterministic synthetic init, PyTorch-equivalent shapes)
# -----------------------------------------------------------------------------
def init_crnn_params(key, embed_dim):
    chans = [(1, 32), (32, 128), (128, 128), (128, 128), (128, 128)]
    keys = jax.random.split(key, len(chans) + 1)
    cnn = []
    for (cin, cout), k in zip(chans, keys[:-1]):
        k1, k2, k3, k4, k5 = jax.random.split(k, 5)
        gamma = 1.0 + 0.1 * jax.random.normal(k1, (cin,), _F32)
        beta = 0.1 * jax.random.normal(k2, (cin,), _F32)
        mean = 0.1 * jax.random.normal(k3, (cin,), _F32)
        var = 1.0 + 0.1 * jnp.abs(jax.random.normal(k4, (cin,), _F32))
        w = 0.05 * jax.random.normal(k5, (3, 3, cin, cout), _F32)  # HWIO
        cnn.append((gamma, beta, mean, var, w))

    D = 128                           # rnn_input_dim = 128 channels * 1 mel-bin
    H = embed_dim // 2
    s = 1.0 / math.sqrt(H)
    kg = jax.random.split(keys[-1], 8)

    def u(k, shape):
        return jax.random.uniform(k, shape, _F32, -s, s)

    # per direction: W_ih^T (D,3H), W_hh^T (H,3H), b_ih (1,3H), b_hh (1,3H)
    gru = (u(kg[0], (D, 3 * H)), u(kg[1], (H, 3 * H)),
           u(kg[2], (1, 3 * H)), u(kg[3], (1, 3 * H)),
           u(kg[4], (D, 3 * H)), u(kg[5], (H, 3 * H)),
           u(kg[6], (1, 3 * H)), u(kg[7], (1, 3 * H)))
    return {"cnn": cnn, "gru": gru}


# -----------------------------------------------------------------------------
# Full forward
# -----------------------------------------------------------------------------
def crnn_encoder_forward(input_dict, params, sample_rate, embed_dim):
    waveform = input_dict["waveform"]
    n_fft = 2048
    win_length = 40 * sample_rate // 1000
    hop_length = 20 * sample_rate // 1000
    n_mels = 64
    downsample_ratio = 4

    power_spec = _power_spectrogram(waveform, n_fft, win_length, hop_length)
    fb = _melscale_fbanks(n_fft // 2 + 1, 0.0, sample_rate / 2.0, n_mels, sample_rate)
    x = mel_db(power_spec, fb)            # (B, T, n_mels) == db(mel).transpose(1,2)
    x = x[..., None]                      # (B, T, n_mels, 1)  NHWC, C=1

    # cdur block + (fused) LPPool schedule matching the torch Sequential.
    pools = [(2, 4), (1, 1), (2, 4), (1, 1), (1, 4)]
    for block_params, (pt, pw) in zip(params["cnn"], pools):
        x = cdur_pool_block(x, block_params, pt, pw)
    # Dropout(0.3): identity in inference mode.

    B, Tp, Fp, C = x.shape
    # matches torch: x.transpose(1,2).flatten(-2)  ->  (B, T', C * F')
    x = jnp.transpose(x, (0, 1, 3, 2)).reshape(B, Tp, C * Fp)      # (B, T', 128)

    embedding = bigru(x, params["gru"], embed_dim)                 # (B, T', embed_dim)

    length = jnp.asarray(input_dict["waveform_len"]).astype(jnp.int32) // hop_length + 1
    length = length // downsample_ratio
    return {"embedding": embedding, "length": length}


# -----------------------------------------------------------------------------
if __name__ == "__main__":
    sample_rate = 16000
    embed_dim = 64
    B = 2
    wav_samples = 8000

    key = jax.random.PRNGKey(0)
    k_wav, k_params = jax.random.split(key)
    waveform = 0.1 * jax.random.normal(k_wav, (B, wav_samples), _F32)
    waveform_len = jnp.array([8000, 7500], dtype=jnp.int32)

    params = init_crnn_params(k_params, embed_dim)

    out = crnn_encoder_forward(
        {"waveform": waveform, "waveform_len": waveform_len},
        params, sample_rate, embed_dim)

    emb = jax.block_until_ready(out["embedding"])
    length = jax.block_until_ready(out["length"])

    # 8000 samples -> 26 frames -> 6 time steps after CNN (downsample_ratio=4)
    assert emb.shape == (B, 6, embed_dim), emb.shape
    assert length.shape == (B,), length.shape
    assert bool(jnp.all(jnp.isfinite(emb)))
    print("KERNEL_OK")
</pallas_src>

<mosaic_0001>
module attributes {stable_mosaic.version = 11 : i64} {
  func.func @_mel_db_kernel(%arg0: i32, %arg1: memref<56x1152xf32, #tpu.memory_space<vmem>>, %arg2: memref<1152x128xf32, #tpu.memory_space<vmem>>, %arg3: memref<56x128xf32, #tpu.memory_space<vmem>>) attributes {dimension_semantics = [#tpu.dimension_semantics<parallel>], iteration_bounds = array<i64: 1>, scalar_prefetch = 0 : i64, scratch_operands = 0 : i64, tpu.core_type = #tpu.core_type<tc>, window_params = [{transform_indices = @transform_0, window_bounds = array<i64: 56, 1152>}, {pipeline_mode = #tpu.pipeline_mode<synchronous>, transform_indices = @transform_1, window_bounds = array<i64: 1152, 128>}, {transform_indices = @transform_2, window_bounds = array<i64: 56, 128>}]} {
    %c0 = arith.constant 0 : index
    %c0_0 = arith.constant 0 : index
    %0 = vector.load %arg1[%c0, %c0_0] : memref<56x1152xf32, #tpu.memory_space<vmem>>, vector<56x1152xf32>
    %c0_1 = arith.constant 0 : index
    %c0_2 = arith.constant 0 : index
    %1 = vector.load %arg2[%c0_1, %c0_2] : memref<1152x128xf32, #tpu.memory_space<vmem>>, vector<1152x128xf32>
    %cst = arith.constant dense<0.000000e+00> : vector<56x128xf32>
    %2 = tpu.matmul %0, %1, %cst {dimension_numbers = #tpu.dot_dimension_numbers<[1], [0], [0], [1], [0, 0, 1, 1], [], []>} : vector<56x1152xf32>, vector<1152x128xf32>, vector<56x128xf32> -> vector<56x128xf32>
    %cst_3 = arith.constant 1.000000e-10 : f32
    %3 = vector.broadcast %cst_3 : f32 to vector<56x128xf32>
    %4 = arith.maximumf %2, %3 : vector<56x128xf32>
    %5 = math.log %4 : vector<56x128xf32>
    %cst_4 = arith.constant 4.34294462 : f32
    %6 = vector.broadcast %cst_4 : f32 to vector<56x128xf32>
    %7 = arith.mulf %6, %5 : vector<56x128xf32>
    %c0_5 = arith.constant 0 : index
    %c0_6 = arith.constant 0 : index
    %8 = vector.load %arg3[%c0_5, %c0_6] : memref<56x128xf32, #tpu.memory_space<vmem>>, vector<56x128xf32>
    tpu.vector_store %arg3[%c0_5, %c0_6], %7 {strides = array<i32>} : memref<56x128xf32, #tpu.memory_space<vmem>>, vector<56x128xf32>,
    return
  }
  func.func @transform_0(%arg0: i32) -> (i32, i32) {
    %c0_i32 = arith.constant 0 : i32
    %c0_i32_0 = arith.constant 0 : i32
    return %arg0, %c0_i32 : i32, i32
  }
  func.func @transform_1(%arg0: i32) -> (i32, i32) {
    %c0_i32 = arith.constant 0 : i32
    %c0_i32_0 = arith.constant 0 : i32
    %c0_i32_1 = arith.constant 0 : i32
    return %c0_i32, %c0_i32_0 : i32, i32
  }
  func.func @transform_2(%arg0: i32) -> (i32, i32) {
    %c0_i32 = arith.constant 0 : i32
    %c0_i32_0 = arith.constant 0 : i32
    return %arg0, %c0_i32 : i32, i32
  }
}

</mosaic_0001>

<bundles_post_ra>
// kernel: tpu_custom_call.1
= control target key start
LH: loop header
LB: loop body
LE: loop exit
PB: predicated region body
PF: predicated region fallthrough
CT: control target
= control target key end

     0   :  { %7 = vsyncpa [#allocation3], 0  ;;  %s878_s0 = inlined_call_operand.hbm [shape: f32[56,1152], index: 0, kind: input, shape index: {}]   ;;  %s879_s1 = inlined_call_operand.hbm [shape: f32[1152,128], index: 1, kind: input, shape index: {}]   ;;  %s880_s2 = inlined_call_operand.hbm [shape: f32[56,128], index: 2, kind: output, shape index: {}]  }
   0x1   :  { %8 = vsyncpa [#allocation6], 0 }
   0x2   :  { %9 = vsyncpa [#allocation4], 0  ;;  %s14_s11 = sshll.u32 %s878_s0, 4  ;;  %s779_s12 = smov [#allocation2]   ;;  %s15_s11 = int_to_ptr.hbm [resolvable:$true] %s14_s11 }
   0x3   :  { %s16_s13 = sshll.u32 %s779_s12, 4  ;;  %s27_s16 = sshll.u32 %s879_s1, 4  ;;  %s17_s13 = int_to_ptr.vmem [resolvable:$true] %s16_s13  ;;  %s28_s16 = int_to_ptr.hbm [resolvable:$true] %s27_s16 }
   0x4   :  { %s780_s17 = smov 1152   ;;  %s781_s18 = smov 72  }
   0x5   :  { %22 = dma.hbm_to_vmem [thread:$0]  %s15_s11, 8064, %s17_s13, [#allocation3], %s780_s17, %s780_s17, %s781_s18  }
   0x6   :  { %s782_s19 = smov [#allocation5]   ;;  %s783_s21 = smov 128  }
   0x7   :  { %s29_s20 = sshll.u32 %s782_s19, 4  ;;  %s784_s22 = smov 8   ;;  %s30_s20 = int_to_ptr.vmem [resolvable:$true] %s29_s20 }
   0x8   :  { %35 = dma.hbm_to_vmem [thread:$0]  %s28_s16, 18432, %s30_s20, [#allocation6], %s783_s21, %s783_s21, %s784_s22  }
   0x9   :  { %773 = dma.done.wait [#allocation3], 8064  }
   0xa   :  { %774 = vsyncadd [#allocation3], 4294959232 }
   0xb   :  { %775 = dma.done.wait [#allocation6], 18432  }
   0xc   :  { %776 = vsyncadd [#allocation6], 4294948864  ;;  %v122_v0 = vld [vmem:[#allocation5 + $0x78] sm:$0xff]  ;;  %v121_v1 = vld [vmem:[#allocation5 + $0x70] sm:$0xff]  ;;  %s785_s0 = smov [#allocation7]   ;;  %s634_s25 = sshll.u32 %s880_s2, 4  ;;  %s635_s25 = int_to_ptr.hbm [resolvable:$true] %s634_s25 }
   0xd   :  { %648 = vmatpush.msra.mxu1 %v122_v0  ;;  %251 = vmatpush.msra.mxu0 %v122_v0  ;;  %v120_v2 = vld [vmem:[#allocation5 + $0x68] sm:$0xff]  ;;  %v154_v3 = vld [vmem:[#allocation5 + $0x178] sm:$0xff]  ;;  %v153_v4 = vld [vmem:[#allocation5 + $0x170] sm:$0xff]  ;;  %s632_s1 = sshll.u32 %s785_s0, 4  ;;  %s633_s1 = int_to_ptr.vmem [resolvable:$true] %s632_s1 }
   0xe   :  { %v119_v5 = vld [vmem:[#allocation5 + $0x60] sm:$0xff]  ;;  %327 = vmatpush.msra.mxu2 %v154_v3  ;;  %v152_v6 = vld [vmem:[#allocation5 + $0x168] sm:$0xff]  ;;  %v118_v7 = vld [vmem:[#allocation5 + $0x58] sm:$0xff] }
   0xf   :  { %649 = vmatpush.msra.mxu1 %v121_v1  ;;  %252 = vmatpush.msra.mxu0 %v121_v1  ;;  %v151_v8 = vld [vmem:[#allocation5 + $0x160] sm:$0xff]  ;;  %v170_v9 = vld [vmem:[#allocation5 + $0x1f8] sm:$0xff]  ;;  %v117_v10 = vld [vmem:[#allocation5 + $0x50] sm:$0xff] }
  0x10   :  { %328 = vmatpush.msra.mxu2 %v153_v4  ;;  %365 = vmatpush.msra.mxu3 %v170_v9  ;;  %v150_v11 = vld [vmem:[#allocation5 + $0x158] sm:$0xff]  ;;  %v169_v12 = vld [vmem:[#allocation5 + $0x1f0] sm:$0xff]  ;;  %v116_v13 = vld [vmem:[#allocation5 + $0x48] sm:$0xff] }
  0x11   :  { %650 = vmatpush.msra.mxu1 %v120_v2  ;;  %253 = vmatpush.msra.mxu0 %v120_v2  ;;  %v168_v14 = vld [vmem:[#allocation5 + $0x1e8] sm:$0xff]  ;;  %v149_v15 = vld [vmem:[#allocation5 + $0x150] sm:$0xff]  ;;  %v167_v16 = vld [vmem:[#allocation5 + $0x1e0] sm:$0xff] }
  0x12   :  { %329 = vmatpush.msra.mxu2 %v152_v6  ;;  %366 = vmatpush.msra.mxu3 %v169_v12  ;;  %v115_v17 = vld [vmem:[#allocation5 + $0x40] sm:$0xff]  ;;  %v148_v18 = vld [vmem:[#allocation5 + $0x148] sm:$0xff]  ;;  %v166_v19 = vld [vmem:[#allocation5 + $0x1d8] sm:$0xff] }
  0x13   :  { %651 = vmatpush.msra.mxu1 %v119_v5  ;;  %254 = vmatpush.msra.mxu0 %v119_v5  ;;  %v114_v20 = vld [vmem:[#allocation5 + $0x38] sm:$0xff]  ;;  %v147_v21 = vld [vmem:[#allocation5 + $0x140] sm:$0xff]  ;;  %v165_v22 = vld [vmem:[#allocation5 + $0x1d0] sm:$0xff] }
  0x14   :  { %330 = vmatpush.msra.mxu2 %v151_v8  ;;  %367 = vmatpush.msra.mxu3 %v168_v14  ;;  %v113_v23 = vld [vmem:[#allocation5 + $0x30] sm:$0xff]  ;;  %v146_v24 = vld [vmem:[#allocation5 + $0x138] sm:$0xff]  ;;  %v164_v25 = vld [vmem:[#allocation5 + $0x1c8] sm:$0xff] }
  0x15   :  { %652 = vmatpush.msra.mxu1 %v118_v7  ;;  %255 = vmatpush.msra.mxu0 %v118_v7  ;;  %v112_v26 = vld [vmem:[#allocation5 + $0x28] sm:$0xff]  ;;  %v145_v27 = vld [vmem:[#allocation5 + $0x130] sm:$0xff]  ;;  %v163_v28 = vld [vmem:[#allocation5 + $0x1c0] sm:$0xff] }
  0x16   :  { %331 = vmatpush.msra.mxu2 %v150_v11  ;;  %368 = vmatpush.msra.mxu3 %v167_v16  ;;  %v111_v29 = vld [vmem:[#allocation5 + $0x20] sm:$0xff]  ;;  %v144_v30 = vld [vmem:[#allocation5 + $0x128] sm:$0xff]  ;;  %v162_v31 = vld [vmem:[#allocation5 + $0x1b8] sm:$0xff] }
  0x17   :  { %653 = vmatpush.msra.mxu1 %v117_v10  ;;  %256 = vmatpush.msra.mxu0 %v117_v10  ;;  %v110_v32 = vld [vmem:[#allocation5 + $0x18] sm:$0xff]  ;;  %v143_v33 = vld [vmem:[#allocation5 + $0x120] sm:$0xff]  ;;  %v161_v34 = vld [vmem:[#allocation5 + $0x1b0] sm:$0xff] }
  0x18   :  { %332 = vmatpush.msra.mxu2 %v149_v15  ;;  %369 = vmatpush.msra.mxu3 %v166_v19  ;;  %v109_v35 = vld [vmem:[#allocation5 + $0x10] sm:$0xff]  ;;  %v142_v36 = vld [vmem:[#allocation5 + $0x118] sm:$0xff]  ;;  %v160_v37 = vld [vmem:[#allocation5 + $0x1a8] sm:$0xff] }
  0x19   :  { %654 = vmatpush.msra.mxu1 %v116_v13  ;;  %257 = vmatpush.msra.mxu0 %v116_v13  ;;  %v108_v38 = vld [vmem:[#allocation5 + $0x8] sm:$0xff]  ;;  %v141_v39 = vld [vmem:[#allocation5 + $0x110] sm:$0xff]  ;;  %v159_v40 = vld [vmem:[#allocation5 + $0x1a0] sm:$0xff] }
  0x1a   :  { %333 = vmatpush.msra.mxu2 %v148_v18  ;;  %370 = vmatpush.msra.mxu3 %v165_v22  ;;  %v107_v41 = vld [vmem:[#allocation5] sm:$0xff]  ;;  %v138_v42 = vld [vmem:[#allocation5 + $0xf8] sm:$0xff]  ;;  %v44_v43 = vld [vmem:[#allocation2] sm:$0xff] }
  0x1b   :  { %655 = vmatpush.msra.mxu1 %v115_v17  ;;  %258 = vmatpush.msra.mxu0 %v115_v17  ;;  %v186_v44 = vld [vmem:[#allocation5 + $0x278] sm:$0xff]  ;;  %v80_v45 = vld [vmem:[#allocation2 + $0x120] sm:$0xff]  ;;  %v137_v46 = vld [vmem:[#allocation5 + $0xf0] sm:$0xff] }
  0x1c   :  { %334 = vmatpush.msra.mxu2 %v147_v21  ;;  %371 = vmatpush.msra.mxu3 %v164_v25  ;;  %v140_v47 = vld [vmem:[#allocation5 + $0x108] sm:$0xff]  ;;  %v185_v48 = vld [vmem:[#allocation5 + $0x270] sm:$0xff]  ;;  %v158_v49 = vld [vmem:[#allocation5 + $0x198] sm:$0xff] }
  0x1d   :  { %656 = vmatpush.msra.mxu1 %v114_v20  ;;  %259 = vmatpush.msra.mxu0 %v114_v20  ;;  %v136_v50 = vld [vmem:[#allocation5 + $0xe8] sm:$0xff]  ;;  %v139_v51 = vld [vmem:[#allocation5 + $0x100] sm:$0xff]  ;;  %v46_v53 = vld [vmem:[#allocation2 + $0x10] sm:$0xff] }
  0x1e   :  { %335 = vmatpush.msra.mxu2 %v146_v24  ;;  %372 = vmatpush.msra.mxu3 %v163_v28  ;;  %v184_v52 = vld [vmem:[#allocation5 + $0x268] sm:$0xff]  ;;  %v135_v54 = vld [vmem:[#allocation5 + $0xe0] sm:$0xff]  ;;  %v218_v55 = vld [vmem:[#allocation5 + $0x378] sm:$0xff] }
  0x1f   :  { %657 = vmatpush.msra.mxu1 %v113_v23  ;;  %260 = vmatpush.msra.mxu0 %v113_v23  ;;  %v183_v56 = vld [vmem:[#allocation5 + $0x260] sm:$0xff]  ;;  %v157_v57 = vld [vmem:[#allocation5 + $0x190] sm:$0xff]  ;;  %v134_v58 = vld [vmem:[#allocation5 + $0xd8] sm:$0xff] }
  0x20   :  { %336 = vmatpush.msra.mxu2 %v145_v27  ;;  %373 = vmatpush.msra.mxu3 %v162_v31  ;;  %v53_v59 = vld [vmem:[#allocation2 + $0x48] sm:$0xff]  ;;  %v182_v60 = vld [vmem:[#allocation5 + $0x258] sm:$0xff]  ;;  %v156_v1 = vld [vmem:[#allocation5 + $0x188] sm:$0xff] }
  0x21   :  { %658 = vmatpush.msra.mxu1 %v112_v26  ;;  %261 = vmatpush.msra.mxu0 %v112_v26  ;;  %v89_v61 = vld [vmem:[#allocation2 + $0x168] sm:$0xff]  ;;  %v132_v2 = vld [vmem:[#allocation5 + $0xc8] sm:$0xff]  ;;  %v55_v5 = vld [vmem:[#allocation2 + $0x58] sm:$0xff] }
  0x22   :  { %337 = vmatpush.msra.mxu2 %v144_v30  ;;  %374 = vmatpush.msra.mxu3 %v161_v34  ;;  %v133_v62 = vld [vmem:[#allocation5 + $0xd0] sm:$0xff]  ;;  %v216_v3 = vld [vmem:[#allocation5 + $0x368] sm:$0xff]  ;;  %v131_v6 = vld [vmem:[#allocation5 + $0xc0] sm:$0xff] }
  0x23   :  { %659 = vmatpush.msra.mxu1 %v111_v29  ;;  %262 = vmatpush.msra.mxu0 %v111_v29  ;;  %v217_v63 = vld [vmem:[#allocation5 + $0x370] sm:$0xff]  ;;  %v180_v4 = vld [vmem:[#allocation5 + $0x248] sm:$0xff]  ;;  %v215_v7 = vld [vmem:[#allocation5 + $0x360] sm:$0xff] }
  0x24   :  { %338 = vmatpush.msra.mxu2 %v143_v33  ;;  %375 = vmatpush.msra.mxu3 %v160_v37  ;;  %v181_v0 = vld [vmem:[#allocation5 + $0x250] sm:$0xff]  ;;  %v179_v8 = vld [vmem:[#allocation5 + $0x240] sm:$0xff]  ;;  %v130_v10 = vld [vmem:[#allocation5 + $0xb8] sm:$0xff] }
  0x25   :  { %660 = vmatpush.msra.mxu1 %v110_v32  ;;  %263 = vmatpush.msra.mxu0 %v110_v32  ;;  %v155_v9 = vld [vmem:[#allocation5 + $0x180] sm:$0xff]  ;;  %v62_v11 = vld [vmem:[#allocation2 + $0x90] sm:$0xff]  ;;  %v129_v14 = vld [vmem:[#allocation5 + $0xb0] sm:$0xff] }
  0x26   :  { %339 = vmatpush.msra.mxu2 %v142_v36  ;;  %376 = vmatpush.msra.mxu3 %v159_v40  ;;  %v178_v12 = vld [vmem:[#allocation5 + $0x238] sm:$0xff]  ;;  %v47_v15 = vld [vmem:[#allocation2 + $0x18] sm:$0xff]  ;;  %v177_v16 = vld [vmem:[#allocation5 + $0x230] sm:$0xff] }
  0x27   :  { %661 = vmatpush.msra.mxu1 %v109_v35  ;;  %264 = vmatpush.msra.mxu0 %v109_v35  ;;  %v98_v13 = vld [vmem:[#allocation2 + $0x1b0] sm:$0xff]  ;;  %v128_v18 = vld [vmem:[#allocation5 + $0xa8] sm:$0xff]  ;;  %v127_v22 = vld [vmem:[#allocation5 + $0xa0] sm:$0xff] }
  0x28   :  { %340 = vmatpush.msra.mxu2 %v141_v39  ;;  %377 = vmatpush.msra.mxu3 %v158_v49  ;;  %v214_v17 = vld [vmem:[#allocation5 + $0x358] sm:$0xff]  ;;  %v176_v20 = vld [vmem:[#allocation5 + $0x228] sm:$0xff]  ;;  %v213_v23 = vld [vmem:[#allocation5 + $0x350] sm:$0xff] }
  0x29   :  { %662 = vmatpush.msra.mxu1 %v108_v38  ;;  %265 = vmatpush.msra.mxu0 %v108_v38  ;;  %v234_v19 = vld [vmem:[#allocation5 + $0x3f8] sm:$0xff]  ;;  %v64_v21 = vld [vmem:[#allocation2 + $0xa0] sm:$0xff]  ;;  %v175_v24 = vld [vmem:[#allocation5 + $0x220] sm:$0xff] }
  0x2a   :  { %341 = vmatpush.msra.mxu2 %v140_v47  ;;  %378 = vmatpush.msra.mxu3 %v157_v57  ;;  %v233_v25 = vld [vmem:[#allocation5 + $0x3f0] sm:$0xff]  ;;  %v126_v26 = vld [vmem:[#allocation5 + $0x98] sm:$0xff]  ;;  %v71_v27 = vld [vmem:[#allocation2 + $0xd8] sm:$0xff] }
  0x2b   :  { %663 = vmatpush.msra.mxu1 %v107_v41  ;;  %266 = vmatpush.msra.mxu0 %v107_v41  ;;  %v174_v28 = vld [vmem:[#allocation5 + $0x218] sm:$0xff]  ;;  %v212_v29 = vld [vmem:[#allocation5 + $0x348] sm:$0xff]  ;;  %v125_v30 = vld [vmem:[#allocation5 + $0x90] sm:$0xff] }
  0x2c   :  { %267 = vmatmul.f32.vlgmr.msra.gmra.mxu0 %v44_v43  ;;  %279 = vmatmul.f32.vlgmr.msra.gmra.mxu1 %v80_v45  ;;  %v232_v31 = vld [vmem:[#allocation5 + $0x3e8] sm:$0xff]  ;;  %v173_v32 = vld [vmem:[#allocation5 + $0x210] sm:$0xff]  ;;  %v211_v35 = vld [vmem:[#allocation5 + $0x340] sm:$0xff] }
  0x2d   :  { %289 = vmatpush.msrb.mxu1 %v138_v42  ;;  %403 = vmatpush.msrb.mxu0 %v186_v44  ;;  %v56_v33 = vld [vmem:[#allocation2 + $0x60] sm:$0xff]  ;;  %v73_v37 = vld [vmem:[#allocation2 + $0xe8] sm:$0xff]  ;;  %v123_v38 = vld [vmem:[#allocation5 + $0x80] sm:$0xff] }
  0x2e   :  { %342 = vmatpush.msra.mxu2 %v139_v51  ;;  %379 = vmatpush.msra.mxu3 %v156_v1  ;;  %v124_v34 = vld [vmem:[#allocation5 + $0x88] sm:$0xff]  ;;  %v231_v39 = vld [vmem:[#allocation5 + $0x3e0] sm:$0xff]  ;;  %v45_v40 = vld [vmem:[#allocation2 + $0x8] sm:$0xff] }
  0x2f   :  { %290 = vmatpush.msrb.mxu1 %v137_v46  ;;  %404 = vmatpush.msrb.mxu0 %v185_v48  ;;  %v172_v36 = vld [vmem:[#allocation5 + $0x208] sm:$0xff]  ;;  %v171_v41 = vld [vmem:[#allocation5 + $0x200] sm:$0xff]  ;;  %v202_v42 = vld [vmem:[#allocation5 + $0x2f8] sm:$0xff] }
  0x30   :  { %343 = vmatmul.f32.vlgmr.msra.gmra.mxu2 %v46_v53  ;;  %380 = vmatpush.msra.mxu3 %v155_v9  ;;  %v48_v43 = vld [vmem:[#allocation2 + $0x20] sm:$0xff]  ;;  %v210_v44 = vld [vmem:[#allocation5 + $0x338] sm:$0xff]  ;;  %v201_v46 = vld [vmem:[#allocation5 + $0x2f0] sm:$0xff] }
  0x31   :  { %291 = vmatpush.msrb.mxu1 %v136_v50  ;;  %405 = vmatpush.msrb.mxu0 %v184_v52  ;;  %v230_v45 = vld [vmem:[#allocation5 + $0x3d8] sm:$0xff]  ;;  %v65_v48 = vld [vmem:[#allocation2 + $0xa8] sm:$0xff]  ;;  %v200_v50 = vld [vmem:[#allocation5 + $0x2e8] sm:$0xff] }
  0x32   :  { %479 = vmatpush.msrb.mxu2 %v218_v55  ;;  %381 = vmatmul.f32.vlgmr.msra.gmra.mxu3 %v47_v15  ;;  %v810_v47 = vld [vmem:[#allocation5 + $0x478] sm:$0xff]  ;;  %v209_v49 = vld [vmem:[#allocation5 + $0x330] sm:$0xff]  ;;  %v208_v55 = vld [vmem:[#allocation5 + $0x328] sm:$0xff] }
  0x33   :  { %292 = vmatpush.msrb.mxu1 %v135_v54  ;;  %406 = vmatpush.msrb.mxu0 %v183_v56  ;;  %v229_v51 = vld [vmem:[#allocation5 + $0x3d0] sm:$0xff]  ;;  %v82_v52 = vld [vmem:[#allocation2 + $0x130] sm:$0xff]  ;;  %v199_v54 = vld [vmem:[#allocation5 + $0x2e0] sm:$0xff] }
  0x34   :  { %270 = vmatmul.f32.gmra.mxu0 %v53_v59  ;;  %282 = vmatmul.f32.gmra.mxu1 %v89_v61  ;;  %v813_v53 = vld [vmem:[#allocation5 + $0x470] sm:$0xff]  ;;  %v54_v56 = vld [vmem:[#allocation2 + $0x50] sm:$0xff]  ;;  %v228_v57 = vld [vmem:[#allocation5 + $0x3c8] sm:$0xff] }
  0x35   :  { %293 = vmatpush.msrb.mxu1 %v134_v58  ;;  %407 = vmatpush.msrb.mxu0 %v182_v60  ;;  %v57_v58 = vld [vmem:[#allocation2 + $0x68] sm:$0xff]  ;;  %v198_v59 = vld [vmem:[#allocation5 + $0x2d8] sm:$0xff]  ;;  %v207_v60 = vld [vmem:[#allocation5 + $0x320] sm:$0xff] }
  0x36   :  { %480 = vmatpush.msrb.mxu2 %v217_v63  ;;  %517 = vmatpush.msrb.mxu3 %v234_v19  ;;  %v227_v61 = vld [vmem:[#allocation5 + $0x3c0] sm:$0xff]  ;;  %v816_v63 = vld [vmem:[#allocation5 + $0x468] sm:$0xff]  ;;  %v206_v1 = vld [vmem:[#allocation5 + $0x318] sm:$0xff] }
  0x37   :  { %294 = vmatpush.msrb.mxu1 %v133_v62  ;;  %408 = vmatpush.msrb.mxu0 %v181_v0  ;;  %v197_v62 = vld [vmem:[#allocation5 + $0x2d0] sm:$0xff]  ;;  %v74_v0 = vld [vmem:[#allocation2 + $0xf0] sm:$0xff]  ;;  %v223_v19 = vld [vmem:[#allocation5 + $0x3a0] sm:$0xff] }
  0x38   :  { %481 = vmatpush.msrb.mxu2 %v216_v3  ;;  %518 = vmatpush.msrb.mxu3 %v233_v25  ;;  %v226_v3 = vld [vmem:[#allocation5 + $0x3b8] sm:$0xff]  ;;  %v225_v9 = vld [vmem:[#allocation5 + $0x3b0] sm:$0xff]  ;;  %v75_v25 = vld [vmem:[#allocation2 + $0xf8] sm:$0xff] }
  0x39   :  { %295 = vmatpush.msrb.mxu1 %v132_v2  ;;  %409 = vmatpush.msrb.mxu0 %v180_v4  ;;  %v196_v2 = vld [vmem:[#allocation5 + $0x2c8] sm:$0xff]  ;;  %v91_v4 = vld [vmem:[#allocation2 + $0x178] sm:$0xff]  ;;  %v822_v15 = vld [vmem:[#allocation5 + $0x458] sm:$0xff] }
  0x3a   :  { %346 = vmatmul.f32.gmra.mxu2 %v55_v5  ;;  %519 = vmatpush.msrb.mxu3 %v232_v31  ;;  %v819_v5 = vld [vmem:[#allocation5 + $0x460] sm:$0xff] }
  0x3b   :  { %296 = vmatpush.msrb.mxu1 %v131_v6  ;;  %482 = vmatpush.msrb.mxu2 %v215_v7  ;;  %v195_v6 = vld [vmem:[#allocation5 + $0x2c0] sm:$0xff]  ;;  %v205_v7 = vld [vmem:[#allocation5 + $0x310] sm:$0xff] }
  0x3c   :  { %410 = vmatpush.msrb.mxu0 %v179_v8  ;;  %285 = vmatmul.f32.gmra.mxu1 %v98_v13  ;;  %v63_v8 = vld [vmem:[#allocation2 + $0x98] sm:$0xff]  ;;  %v224_v13 = vld [vmem:[#allocation5 + $0x3a8] sm:$0xff] }
  0x3d   :  { %297 = vmatpush.msrb.mxu1 %v130_v10  ;;  %273 = vmatmul.f32.gmra.mxu0 %v62_v11  ;;  %v66_v10 = vld [vmem:[#allocation2 + $0xb0] sm:$0xff]  ;;  %v243_v31 = vld [vmem:[#allocation5 + $0x440] sm:$0xff] }
  0x3e   :  { %411 = vmatpush.msrb.mxu0 %v178_v12  ;;  %483 = vmatpush.msrb.mxu2 %v214_v17  ;;  %v194_v11 = vld [vmem:[#allocation5 + $0x2b8] sm:$0xff]  ;;  %v204_v12 = vld [vmem:[#allocation5 + $0x308] sm:$0xff]  ;;  %v203_v17 = vld [vmem:[#allocation5 + $0x300] sm:$0xff] }
  0x3f   :  { %298 = vmatpush.msrb.mxu1 %v129_v14  ;;  %384 = vmatmul.f32.gmra.mxu3 %v56_v33  ;;  %v193_v14 = vld [vmem:[#allocation5 + $0x2b0] sm:$0xff]  ;;  %v50_v33 = vld [vmem:[#allocation2 + $0x30] sm:$0xff] }
  0x40   :  { %412 = vmatpush.msrb.mxu0 %v177_v16  ;;  %484 = vmatpush.msrb.mxu2 %v213_v23  ;;  %v83_v16 = vld [vmem:[#allocation2 + $0x138] sm:$0xff]  ;;  %v222_v23 = vld [vmem:[#allocation5 + $0x398] sm:$0xff] }
  0x41   :  { %299 = vmatpush.msrb.mxu1 %v128_v18  ;;  %520 = vmatpush.msrb.mxu3 %v231_v39  ;;  %v192_v18 = vld [vmem:[#allocation5 + $0x2a8] sm:$0xff] }
  0x42   :  { %413 = vmatpush.msrb.mxu0 %v176_v20  ;;  %349 = vmatmul.f32.gmra.mxu2 %v64_v21  ;;  %v100_v20 = vld [vmem:[#allocation2 + $0x1c0] sm:$0xff]  ;;  %v245_v21 = vld [vmem:[#allocation5 + $0x450] sm:$0xff] }
  0x43   :  { %300 = vmatpush.msrb.mxu1 %v127_v22  ;;  %485 = vmatpush.msrb.mxu2 %v212_v29  ;;  %v191_v22 = vld [vmem:[#allocation5 + $0x2a0] sm:$0xff]  ;;  %v189_v29 = vld [vmem:[#allocation5 + $0x290] sm:$0xff]  ;;  %v84_v39 = vld [vmem:[#allocation2 + $0x140] sm:$0xff] }
  0x44   :  { %414 = vmatpush.msrb.mxu0 %v175_v24  ;;  %521 = vmatpush.msrb.mxu3 %v230_v45  ;;  %v72_v24 = vld [vmem:[#allocation2 + $0xe0] sm:$0xff]  ;;  %v238_v45 = vld [vmem:[#allocation5 + $0x418] sm:$0xff] }
  0x45   :  { %301 = vmatpush.msrb.mxu1 %v126_v26  ;;  %276 = vmatmul.f32.gmra.mxu0 %v71_v27  ;;  %v190_v26 = vld [vmem:[#allocation5 + $0x298] sm:$0xff]  ;;  %v244_v27 = vld [vmem:[#allocation5 + $0x448] sm:$0xff] }
  0x46   :  { %415 = vmatpush.msrb.mxu0 %v174_v28  ;;  %486 = vmatpush.msrb.mxu2 %v211_v35  ;;  %v221_v28 = vld [vmem:[#allocation5 + $0x390] sm:$0xff]  ;;  %v188_v35 = vld [vmem:[#allocation5 + $0x288] sm:$0xff] }
  0x47   :  { %302 = vmatpush.msrb.mxu1 %v125_v30  ;;  %387 = vmatmul.f32.gmra.mxu3 %v65_v48  ;;  %v92_v30 = vld [vmem:[#allocation2 + $0x180] sm:$0xff]  ;;  %v93_v48 = vld [vmem:[#allocation2 + $0x188] sm:$0xff] }
  0x48   :  { %416 = vmatpush.msrb.mxu0 %v173_v32  ;;  %487 = vmatpush.msrb.mxu2 %v210_v44  ;;  %v220_v32 = vld [vmem:[#allocation5 + $0x388] sm:$0xff]  ;;  %v59_v44 = vld [vmem:[#allocation2 + $0x78] sm:$0xff] }
  0x49   :  { %303 = vmatpush.msrb.mxu1 %v124_v34  ;;  %522 = vmatpush.msrb.mxu3 %v229_v51  ;;  %v242_v34 = vld [vmem:[#allocation5 + $0x438] sm:$0xff]  ;;  %v235_v51 = vld [vmem:[#allocation5 + $0x400] sm:$0xff] }
  0x4a   :  { %417 = vmatpush.msrb.mxu0 %v172_v36  ;;  %352 = vmatmul.f32.gmra.mxu2 %v73_v37  ;;  %v219_v36 = vld [vmem:[#allocation5 + $0x380] sm:$0xff]  ;;  %v81_v37 = vld [vmem:[#allocation2 + $0x128] sm:$0xff] }
  0x4b   :  { %304 = vmatpush.msrb.mxu1 %v123_v38  ;;  %488 = vmatpush.msrb.mxu2 %v209_v49  ;;  %v241_v38 = vld [vmem:[#allocation5 + $0x430] sm:$0xff]  ;;  %v236_v49 = vld [vmem:[#allocation5 + $0x408] sm:$0xff] }
  0x4c   :  { %305 = vmatmul.f32.vlgmr.msrb.gmra.mxu1 %v45_v40  ;;  %418 = vmatpush.msrb.mxu0 %v171_v41  ;;  %v240_v40 = vld [vmem:[#allocation5 + $0x428] sm:$0xff]  ;;  %v187_v41 = vld [vmem:[#allocation5 + $0x280] sm:$0xff] }
  0x4d   :  { %441 = vmatpush.msra.mxu1 %v202_v42  ;;  %419 = vmatmul.f32.vlgmr.msrb.gmra.mxu0 %v48_v43  ;;  %v101_v42 = vld [vmem:[#allocation2 + $0x1c8] sm:$0xff]  ;;  %v239_v43 = vld [vmem:[#allocation5 + $0x420] sm:$0xff] }
  0x4e   :  { %555 = vmatpush.msra.mxu0 %v810_v47  ;;  %489 = vmatpush.msrb.mxu2 %v208_v55  ;;  %v60_v55 = vld [vmem:[#allocation2 + $0x80] sm:$0xff] }
  0x4f   :  { %442 = vmatpush.msra.mxu1 %v201_v46  ;;  %523 = vmatpush.msrb.mxu3 %v228_v57  ;;  %v90_v46 = vld [vmem:[#allocation2 + $0x170] sm:$0xff]  ;;  %v49_v57 = vld [vmem:[#allocation2 + $0x28] sm:$0xff] }
  0x50   :  { %556 = vmatpush.msra.mxu0 %v813_v53  ;;  %490 = vmatpush.msrb.mxu2 %v207_v60  ;;  %v86_v60 = vld [vmem:[#allocation2 + $0x150] sm:$0xff] }
  0x51   :  { %443 = vmatpush.msra.mxu1 %v200_v50  ;;  %524 = vmatpush.msrb.mxu3 %v227_v61  ;;  %v51_v50 = vld [vmem:[#allocation2 + $0x38] sm:$0xff]  ;;  %v58_v61 = vld [vmem:[#allocation2 + $0x70] sm:$0xff] }
  0x52   :  { %355 = vmatmul.f32.gmra.mxu2 %v82_v52  ;;  %557 = vmatpush.msra.mxu0 %v816_v63  ;;  %v68_v52 = vld [vmem:[#allocation2 + $0xc0] sm:$0xff] }
  0x53   :  { %444 = vmatpush.msra.mxu1 %v199_v54  ;;  %390 = vmatmul.f32.gmra.mxu3 %v74_v0  ;;  %v102_v54 = vld [vmem:[#allocation2 + $0x1d0] sm:$0xff]  ;;  %v95_v0 = vld [vmem:[#allocation2 + $0x198] sm:$0xff] }
  0x54   :  { %308 = vmatmul.f32.gmra.mxu1 %v54_v56  ;;  %491 = vmatpush.msrb.mxu2 %v206_v1  ;;  %v77_v56 = vld [vmem:[#allocation2 + $0x108] sm:$0xff]  ;;  %v67_v1 = vld [vmem:[#allocation2 + $0xb8] sm:$0xff] }
  0x55   :  { %422 = vmatmul.f32.gmra.mxu0 %v57_v58  ;;  %445 = vmatpush.msra.mxu1 %v198_v59  ;;  %v52_v58 = vld [vmem:[#allocation2 + $0x40] sm:$0xff]  ;;  %v69_v59 = vld [vmem:[#allocation2 + $0xc8] sm:$0xff] }
  0x56   :  { %525 = vmatpush.msrb.mxu3 %v226_v3  ;;  %558 = vmatpush.msra.mxu0 %v819_v5  ;;  %v87_v3 = vld [vmem:[#allocation2 + $0x158] sm:$0xff] }
  0x57   :  { %446 = vmatpush.msra.mxu1 %v197_v62  ;;  %492 = vmatpush.msrb.mxu2 %v205_v7  ;;  %v61_v62 = vld [vmem:[#allocation2 + $0x88] sm:$0xff]  ;;  %v96_v7 = vld [vmem:[#allocation2 + $0x1a0] sm:$0xff] }
  0x58   :  { %526 = vmatpush.msrb.mxu3 %v225_v9  ;;  %559 = vmatpush.msra.mxu0 %v822_v15  ;;  %v85_v9 = vld [vmem:[#allocation2 + $0x148] sm:$0xff] }
  0x59   :  { %447 = vmatpush.msra.mxu1 %v196_v2  ;;  %493 = vmatpush.msrb.mxu2 %v204_v12  ;;  %v70_v2 = vld [vmem:[#allocation2 + $0xd0] sm:$0xff] }
  0x5a   :  { %358 = vmatmul.f32.gmra.mxu2 %v91_v4  ;;  %527 = vmatpush.msrb.mxu3 %v224_v13  ;;  %v104_v4 = vld [vmem:[#allocation2 + $0x1e0] sm:$0xff]  ;;  %v106_v12 = vld [vmem:[#allocation2 + $0x1f0] sm:$0xff] }
  0x5b   :  { %448 = vmatpush.msra.mxu1 %v195_v6  ;;  %393 = vmatmul.f32.gmra.mxu3 %v83_v16  ;;  %v79_v6 = vld [vmem:[#allocation2 + $0x118] sm:$0xff]  ;;  %v94_v13 = vld [vmem:[#allocation2 + $0x190] sm:$0xff] }
  0x5c   :  { %311 = vmatmul.f32.gmra.mxu1 %v63_v8  ;;  %494 = vmatpush.msrb.mxu2 %v203_v17  ;;  %v97_v8 = vld [vmem:[#allocation2 + $0x1a8] sm:$0xff]  ;;  %v103_v16 = vld [vmem:[#allocation2 + $0x1d8] sm:$0xff] }
  0x5d   :  { %425 = vmatmul.f32.gmra.mxu0 %v66_v10  ;;  %449 = vmatpush.msra.mxu1 %v194_v11  ;;  %v88_v10 = vld [vmem:[#allocation2 + $0x160] sm:$0xff]  ;;  %v105_v11 = vld [vmem:[#allocation2 + $0x1e8] sm:$0xff] }
  0x5e   :  { %528 = vmatpush.msrb.mxu3 %v223_v19  ;;  %560 = vmatpush.msra.mxu0 %v245_v21 }
  0x5f   :  { %450 = vmatpush.msra.mxu1 %v193_v14  ;;  %664 = vmatpush.msra.mxu2 %v810_v47  ;;  %v237_v47 = vld [vmem:[#allocation5 + $0x410] sm:$0xff] }
  0x60   :  { %529 = vmatpush.msrb.mxu3 %v222_v23  ;;  %561 = vmatpush.msra.mxu0 %v244_v27 }
  0x61   :  { %451 = vmatpush.msra.mxu1 %v192_v18  ;;  %665 = vmatpush.msra.mxu2 %v813_v53  ;;  %v99_v53 = vld [vmem:[#allocation2 + $0x1b8] sm:$0xff] }
  0x62   :  { %361 = vmatmul.f32.gmra.mxu2 %v100_v20  ;;  %530 = vmatpush.msrb.mxu3 %v221_v28 }
  0x63   :  { %452 = vmatpush.msra.mxu1 %v191_v22  ;;  %396 = vmatmul.f32.gmra.mxu3 %v92_v30 }
  0x64   :  { %314 = vmatmul.f32.gmra.mxu1 %v72_v24  ;;  %562 = vmatpush.msra.mxu0 %v243_v31 }
  0x65   :  { %428 = vmatmul.f32.gmra.mxu0 %v75_v25  ;;  %453 = vmatpush.msra.mxu1 %v190_v26 }
  0x66   :  { %531 = vmatpush.msrb.mxu3 %v220_v32  ;;  %666 = vmatpush.msra.mxu2 %v816_v63  ;;  %v78_v63 = vld [vmem:[#allocation2 + $0x110] sm:$0xff] }
  0x67   :  { %454 = vmatpush.msra.mxu1 %v189_v29  ;;  %563 = vmatpush.msra.mxu0 %v242_v34 }
  0x68   :  { %532 = vmatpush.msrb.mxu3 %v219_v36  ;;  %667 = vmatpush.msra.mxu2 %v819_v5  ;;  %v76_v5 = vld [vmem:[#allocation2 + $0x100] sm:$0xff] }
  0x69   :  { %455 = vmatpush.msra.mxu1 %v188_v35  ;;  %564 = vmatpush.msra.mxu0 %v241_v38 }
  0x6a   :  { %495 = vmatmul.f32.vlgmr.msrb.gmra.mxu2 %v50_v33 }
  0x6b   :  { %565 = vmatpush.msra.mxu0 %v240_v40  ;;  %456 = vmatpush.msra.mxu1 %v187_v41 }
  0x6c   :  { %317 = vmatmul.f32.gmra.mxu1 %v81_v37  ;;  %668 = vmatpush.msra.mxu2 %v822_v15 }
  0x6d   :  { %431 = vmatmul.f32.gmra.mxu0 %v84_v39  ;;  %399 = vmatmul.f32.gmra.mxu3 %v101_v42 }
  0x6e   :  { %566 = vmatpush.msra.mxu0 %v239_v43  ;;  %669 = vmatpush.msra.mxu2 %v245_v21 }
  0x70   :  { %567 = vmatpush.msra.mxu0 %v238_v45  ;;  %670 = vmatpush.msra.mxu2 %v244_v27 }
  0x72   :  { %498 = vmatmul.f32.gmra.mxu2 %v59_v44  ;;  %568 = vmatpush.msra.mxu0 %v237_v47 }
  0x73   :  { %671 = vmatpush.msra.mxu2 %v243_v31 }
  0x74   :  { %320 = vmatmul.f32.gmra.mxu1 %v90_v46  ;;  %569 = vmatpush.msra.mxu0 %v236_v49 }
  0x75   :  { %434 = vmatmul.f32.gmra.mxu0 %v93_v48  ;;  %672 = vmatpush.msra.mxu2 %v242_v34 }
  0x76   :  { %533 = vmatmul.f32.vlgmr.msrb.gmra.mxu3 %v51_v50  ;;  %570 = vmatpush.msra.mxu0 %v235_v51 }
  0x77   :  { %673 = vmatpush.msra.mxu2 %v241_v38 }
  0x79   :  { %674 = vmatpush.msra.mxu2 %v240_v40 }
  0x7a   :  { %501 = vmatmul.f32.gmra.mxu2 %v68_v52 }
  0x7b   :  { %675 = vmatpush.msra.mxu2 %v239_v43 }
  0x7c   :  { %323 = vmatmul.f32.gmra.mxu1 %v99_v53 }
  0x7d   :  { %437 = vmatmul.f32.gmra.mxu0 %v102_v54  ;;  %676 = vmatpush.msra.mxu2 %v238_v45 }
  0x7e   :  { %536 = vmatmul.f32.gmra.mxu3 %v60_v55 }
  0x7f   :  { %677 = vmatpush.msra.mxu2 %v237_v47 }
  0x81   :  { %678 = vmatpush.msra.mxu2 %v236_v49 }
  0x82   :  { %504 = vmatmul.f32.gmra.mxu2 %v77_v56 }
  0x83   :  { %679 = vmatpush.msra.mxu2 %v235_v51 }
  0x84   :  { %457 = vmatmul.f32.vlgmr.msra.gmra.mxu1 %v49_v57 }
  0x85   :  { %571 = vmatmul.f32.vlgmr.msra.gmra.mxu0 %v52_v58 }
  0x86   :  { %539 = vmatmul.f32.gmra.mxu3 %v69_v59 }
  0x8a   :  { %507 = vmatmul.f32.gmra.mxu2 %v86_v60 }
  0x8c   :  { %460 = vmatmul.f32.gmra.mxu1 %v58_v61 }
  0x8d   :  { %574 = vmatmul.f32.gmra.mxu0 %v61_v62 }
  0x8e   :  { %542 = vmatmul.f32.gmra.mxu3 %v78_v63 }
  0x92   :  { %510 = vmatmul.f32.gmra.mxu2 %v95_v0 }
  0x94   :  { %463 = vmatmul.f32.gmra.mxu1 %v67_v1 }
  0x95   :  { %577 = vmatmul.f32.gmra.mxu0 %v70_v2 }
  0x96   :  { %545 = vmatmul.f32.gmra.mxu3 %v87_v3 }
  0x9a   :  { %513 = vmatmul.f32.gmra.mxu2 %v104_v4 }
  0x9c   :  { %466 = vmatmul.f32.gmra.mxu1 %v76_v5 }
  0x9d   :  { %580 = vmatmul.f32.gmra.mxu0 %v79_v6 }
  0x9e   :  { %548 = vmatmul.f32.gmra.mxu3 %v96_v7 }
  0xa2   :  { %586 = vmatmul.f32.vlgmr.msra.gmra.mxu2 %v97_v8 }
  0xa4   :  { %469 = vmatmul.f32.gmra.mxu1 %v85_v9 }
  0xa5   :  { %583 = vmatmul.f32.gmra.mxu0 %v88_v10 }
  0xa6   :  { %551 = vmatmul.f32.gmra.mxu3 %v105_v11 }
  0xa9   :  { %v268_v14 = vpop.f32.mrf.mxu0  ;;  %v830_v15 = vpop.f32.mrf.mxu1 }
  0xaa   :  { %589 = vmatmul.f32.gmra.mxu2 %v106_v12 }
  0xac   :  { %472 = vmatmul.f32.gmra.mxu1 %v94_v13 }
  0xb1   :  { %v271_v17 = vpop.f32.mrf.mxu0  ;;  %v832_v18 = vpop.f32.mrf.mxu1 }
  0xb3   :  { %v344_v19 = vpop.f32.mrf.mxu2 }
  0xb4   :  { %475 = vmatmul.f32.gmra.mxu1 %v103_v16 }
  0xb5   :  { %v382_v24 = vpop.f32.mrf.mxu3 }
  0xb9   :  { %v834_v22 = vpop.f32.mrf.mxu1 }
  0xba   :  { %v274_v20 = vpop.f32.mrf.mxu0 }
  0xbd   :  { %v347_v21 = vpop.f32.mrf.mxu2 }
  0xc2   :  { %v277_v23 = vpop.f32.mrf.mxu0  ;;  %v385_v28 = vpop.f32.mrf.mxu3 }
  0xc5   :  { %v350_v25 = vpop.f32.mrf.mxu2 }
  0xc9   :  { %v306_v26 = vpop.f32.mrf.mxu1 }
  0xca   :  { %v420_v27 = vpop.f32.mrf.mxu0  ;;  %v388_v32 = vpop.f32.mrf.mxu3  ;;  %v307_v49 = vadd.f32 %v306_v26, %v268_v14 }
  0xcc   :  { %v345_v51 = vadd.f32 %v344_v19, %v307_v49 }
  0xcd   :  { %v353_v29 = vpop.f32.mrf.mxu2 }
  0xce   :  { %v383_v55 = vadd.f32 %v382_v24, %v345_v51 }
  0xd0   :  { %v421_v58 = vadd.f32 %v420_v27, %v383_v55 }
  0xd1   :  { %v309_v30 = vpop.f32.mrf.mxu1 }
  0xd2   :  { %v423_v31 = vpop.f32.mrf.mxu0  ;;  %v310_v56 = vadd.f32 %v309_v30, %v271_v17 }
  0xd4   :  { %v348_v59 = vadd.f32 %v347_v21, %v310_v56 }
  0xd5   :  { %v836_v33 = vpop.f32.mrf.mxu2 }
  0xd6   :  { %v391_v36 = vpop.f32.mrf.mxu3  ;;  %v386_v0 = vadd.f32 %v385_v28, %v348_v59 }
  0xd8   :  { %v424_v5 = vadd.f32 %v423_v31, %v386_v0 }
  0xd9   :  { %v312_v34 = vpop.f32.mrf.mxu1 }
  0xda   :  { %v426_v35 = vpop.f32.mrf.mxu0  ;;  %v313_v1 = vadd.f32 %v312_v34, %v274_v20 }
  0xdc   :  { %v351_v6 = vadd.f32 %v350_v25, %v313_v1 }
  0xdd   :  { %v838_v37 = vpop.f32.mrf.mxu2 }
  0xde   :  { %v840_v40 = vpop.f32.mrf.mxu3  ;;  %v389_v13 = vadd.f32 %v388_v32, %v351_v6 }
  0xe0   :  { %v427_v21 = vadd.f32 %v426_v35, %v389_v13 }
  0xe1   :  { %v315_v38 = vpop.f32.mrf.mxu1 }
  0xe2   :  { %v429_v39 = vpop.f32.mrf.mxu0  ;;  %v316_v14 = vadd.f32 %v315_v38, %v277_v23 }
  0xe4   :  { %v354_v24 = vadd.f32 %v353_v29, %v316_v14 }
  0xe5   :  { %v842_v41 = vpop.f32.mrf.mxu2 }
  0xe6   :  { %v846_v44 = vpop.f32.mrf.mxu3  ;;  %v392_v34 = vadd.f32 %v391_v36, %v354_v24 }
  0xe8   :  { %v430_v51 = vadd.f32 %v429_v39, %v392_v34 }
  0xe9   :  { %v318_v42 = vpop.f32.mrf.mxu1 }
  0xea   :  { %v844_v43 = vpop.f32.mrf.mxu0 }
  0xed   :  { %v496_v45 = vpop.f32.mrf.mxu2 }
  0xf0   :  { %v852_v48 = vpop.f32.mrf.mxu3 }
  0xf1   :  { %v848_v46 = vpop.f32.mrf.mxu1 }
  0xf2   :  { %v850_v47 = vpop.f32.mrf.mxu0 }
  0xf5   :  { %v499_v50 = vpop.f32.mrf.mxu2 }
  0xf9   :  { %v854_v52 = vpop.f32.mrf.mxu1  ;;  %v534_v54 = vpop.f32.mrf.mxu3 }
  0xfa   :  { %v856_v53 = vpop.f32.mrf.mxu0 }
  0xfd   :  { %v502_v57 = vpop.f32.mrf.mxu2 }
 0x101   :  { %v458_v60 = vpop.f32.mrf.mxu1  ;;  %v537_v63 = vpop.f32.mrf.mxu3 }
 0x102   :  { %v459_v61 = vadd.f32 %v458_v60, %v421_v58  ;;  %v572_v62 = vpop.f32.mrf.mxu0 }
 0x104   :  { %v497_v2 = vadd.f32 %v496_v45, %v459_v61  ;;  %v319_v45 = vadd.f32 %v318_v42, %v830_v15  ;;  %v322_v15 = vadd.f32 %v848_v46, %v832_v18  ;;  %v325_v18 = vadd.f32 %v854_v52, %v834_v22 }
 0x105   :  { %v505_v3 = vpop.f32.mrf.mxu2 }
 0x106   :  { %v535_v4 = vadd.f32 %v534_v54, %v497_v2  ;;  %v357_v29 = vadd.f32 %v836_v33, %v319_v45 }
 0x108   :  { %v573_v7 = vadd.f32 %v572_v62, %v535_v4  ;;  %v395_v36 = vadd.f32 %v840_v40, %v357_v29  ;;  %v360_v62 = vadd.f32 %v838_v37, %v322_v15 }
 0x109   :  { %v461_v8 = vpop.f32.mrf.mxu1  ;;  %v540_v12 = vpop.f32.mrf.mxu3 }
 0x10a   :  { %v593_v9 = vmax.f32 %v573_v7, 1e-10  ;;  %v462_v10 = vadd.f32 %v461_v8, %v424_v5  ;;  %v575_v11 = vpop.f32.mrf.mxu0  ;;  %v433_v33 = vadd.f32 %v844_v43, %v395_v36  ;;  %v398_v6 = vadd.f32 %v846_v44, %v360_v62 }
 0x10b   :  { %v363_v43 = vadd.f32 %v842_v41, %v325_v18 }
 0x10c   :  { %687 = vlog2.f32 %v593_v9  ;;  %v500_v16 = vadd.f32 %v499_v50, %v462_v10  ;;  %v436_v37 = vadd.f32 %v850_v47, %v398_v6 }
 0x10d   :  { %v508_v17 = vpop.f32.mrf.mxu2  ;;  %v401_v22 = vadd.f32 %v852_v48, %v363_v43 }
 0x10e   :  { %v538_v19 = vadd.f32 %v537_v63, %v500_v16 }
 0x110   :  { %v576_v20 = vadd.f32 %v575_v11, %v538_v19 }
 0x111   :  { %v464_v26 = vpop.f32.mrf.mxu1  ;;  %v543_v23 = vpop.f32.mrf.mxu3 }
 0x112   :  { %v688_v27 = vpop.eup %687  ;;  %v594_v28 = vmax.f32 %v576_v20, 1e-10  ;;  %v465_v30 = vadd.f32 %v464_v26, %v427_v21  ;;  %v578_v25 = vpop.f32.mrf.mxu0  ;;  %v439_v21 = vadd.f32 %v856_v53, %v401_v22 }
 0x113   :  { %v601_v31 = vmul.f32 0.6931472, %v688_v27 }
 0x114   :  { %689 = vlog2.f32 %v594_v28  ;;  %v503_v49 = vadd.f32 %v502_v57, %v465_v30 }
 0x115   :  { %v614_v32 = vmul.f32 4.3429446, %v601_v31  ;;  %v511_v50 = vpop.f32.mrf.mxu2 }
 0x116   :  { %v541_v38 = vadd.f32 %v540_v12, %v503_v49 }
 0x117   :  { %621 = vst [vmem:[#allocation7] sm:$0xff] %v614_v32 }
 0x118   :  { %v579_v35 = vadd.f32 %v578_v25, %v541_v38 }
 0x119   :  { %v467_v54 = vpop.f32.mrf.mxu1  ;;  %v546_v39 = vpop.f32.mrf.mxu3 }
 0x11a   :  { %v690_v55 = vpop.eup %689  ;;  %v595_v56 = vmax.f32 %v579_v35, 1e-10  ;;  %v468_v58 = vadd.f32 %v467_v54, %v430_v51  ;;  %v581_v60 = vpop.f32.mrf.mxu0 }
 0x11b   :  { %v603_v59 = vmul.f32 0.6931472, %v690_v55 }
 0x11c   :  { %691 = vlog2.f32 %v595_v56  ;;  %v506_v42 = vadd.f32 %v505_v3, %v468_v58 }
 0x11d   :  { %v615_v57 = vmul.f32 4.3429446, %v603_v59  ;;  %v514_v1 = vpop.f32.mrf.mxu2 }
 0x11e   :  { %v544_v61 = vadd.f32 %v543_v23, %v506_v42 }
 0x11f   :  { %622 = vst [vmem:[#allocation7 + $0x8] sm:$0xff] %v615_v57 }
 0x120   :  { %v582_v63 = vadd.f32 %v581_v60, %v544_v61 }
 0x121   :  { %v470_v0 = vpop.f32.mrf.mxu1  ;;  %v549_v11 = vpop.f32.mrf.mxu3 }
 0x122   :  { %v692_v2 = vpop.eup %691  ;;  %v596_v4 = vmax.f32 %v582_v63, 1e-10  ;;  %v471_v5 = vadd.f32 %v470_v0, %v433_v33  ;;  %v584_v7 = vpop.f32.mrf.mxu0 }
 0x123   :  { %v605_v40 = vmul.f32 0.6931472, %v692_v2 }
 0x124   :  { %693 = vlog2.f32 %v596_v4  ;;  %v509_v46 = vadd.f32 %v508_v17, %v471_v5 }
 0x125   :  { %v616_v3 = vmul.f32 4.3429446, %v605_v40  ;;  %v587_v16 = vpop.f32.mrf.mxu2 }
 0x126   :  { %v547_v8 = vadd.f32 %v546_v39, %v509_v46 }
 0x127   :  { %623 = vst [vmem:[#allocation7 + $0x10] sm:$0xff] %v616_v3 }
 0x128   :  { %v585_v9 = vadd.f32 %v584_v7, %v547_v8 }
 0x129   :  { %v473_v10 = vpop.f32.mrf.mxu1  ;;  %v552_v28 = vpop.f32.mrf.mxu3 }
 0x12a   :  { %v694_v12 = vpop.eup %693  ;;  %v597_v13 = vmax.f32 %v585_v9, 1e-10  ;;  %v474_v14 = vadd.f32 %v473_v10, %v436_v37 }
 0x12b   :  { %v607_v44 = vmul.f32 0.6931472, %v694_v12 }
 0x12c   :  { %695 = vlog2.f32 %v597_v13  ;;  %v512_v52 = vadd.f32 %v511_v50, %v474_v14 }
 0x12d   :  { %v617_v17 = vmul.f32 4.3429446, %v607_v44  ;;  %v590_v31 = vpop.f32.mrf.mxu2 }
 0x12e   :  { %v550_v19 = vadd.f32 %v549_v11, %v512_v52 }
 0x12f   :  { %624 = vst [vmem:[#allocation7 + $0x18] sm:$0xff] %v617_v17 }
 0x130   :  { %v588_v47 = vadd.f32 %v587_v16, %v550_v19 }
 0x131   :  { %v476_v24 = vpop.f32.mrf.mxu1 }
 0x132   :  { %v696_v41 = vpop.eup %695  ;;  %v598_v20 = vmax.f32 %v588_v47, 1e-10  ;;  %v477_v26 = vadd.f32 %v476_v24, %v439_v21 }
 0x133   :  { %v609_v27 = vmul.f32 0.6931472, %v696_v41 }
 0x134   :  { %697 = vlog2.f32 %v598_v20  ;;  %v515_v30 = vadd.f32 %v514_v1, %v477_v26 }
 0x135   :  { %v618_v25 = vmul.f32 4.3429446, %v609_v27 }
 0x136   :  { %v553_v34 = vadd.f32 %v552_v28, %v515_v30 }
 0x137   :  { %625 = vst [vmem:[#allocation7 + $0x20] sm:$0xff] %v618_v25 }
 0x138   :  { %v591_v48 = vadd.f32 %v590_v31, %v553_v34 }
 0x13a   :  { %v698_v45 = vpop.eup %697  ;;  %v599_v49 = vmax.f32 %v591_v48, 1e-10 }
 0x13b   :  { %v611_v32 = vmul.f32 0.6931472, %v698_v45 }
 0x13c   :  { %699 = vlog2.f32 %v599_v49 }
 0x13d   :  { %v619_v23 = vmul.f32 4.3429446, %v611_v32 }
 0x13f   :  { %626 = vst [vmem:[#allocation7 + $0x28] sm:$0xff] %v619_v23 }
 0x142   :  { %v700_v53 = vpop.eup %699 }
 0x143   :  { %v613_v38 = vmul.f32 0.6931472, %v700_v53 }
 0x145   :  { %v620_v50 = vmul.f32 4.3429446, %v613_v38 }
 0x147   :  { %627 = vst [vmem:[#allocation7 + $0x30] sm:$0xff] %v620_v50 }
 0x148   :  { %640 = dma.vmem_to_hbm [thread:$0]  %s633_s1, 896, %s635_s25, [#allocation4], %s783_s21, %s783_s21, %s784_s22  }
 0x149   :  { %777 = dma.done.wait [#allocation4], 896  }
 0x14a   :  { %778 = vsyncadd [#allocation4], 4294966400 }
 0x14b   :  { %645 = vsyncpa [#allocation3], 1 }
 0x14c   :  { %646 = vsyncpa [#allocation6], 1 }
 0x14d   :  { %647 = vsyncpa [#allocation4], 1 }

</bundles_post_ra>
